<compile_context>
chip_gen: v7x
topology: tpu7x:2x2x1
jax: 0.10.0
libtpu: 0.0.40
codegen_flags: <defaults>
</compile_context>

<pallas_src>
import math

import numpy as np
import jax
import jax.numpy as jnp
from jax import lax
from jax.experimental import pallas as pl
from jax.experimental.pallas import tpu as pltpu


def _lane_tables(Z, C, orig_ch):
    """Per-lane tables for the flattened (z, ch) lane axis, built in float64.

    For lane l: c = l % orig_ch (channel), z = l // orig_ch.
    Channel segments: [0, C) -> x encoding, [C, 2C) -> y, [2C, 3C) -> z,
    [3C, orig_ch) -> zero (matches the zero-initialized torch buffer).
    """
    half = C // 2
    Lz = Z * orig_ch
    l = np.arange(Lz)
    c = l % orig_ch
    z = l // orig_ch
    seg = c // C
    cc = c - seg * C
    is_cos = cc >= half
    j = np.where(is_cos, cc - half, cc).astype(np.float64)
    inv_freq = 1.0 / (10000.0 ** (2.0 * j / C))

    fx = np.where(seg == 0, inv_freq, 0.0)          # x-segment frequency
    fy = np.where(seg == 1, inv_freq, 0.0)          # y-segment frequency
    off = np.where(is_cos, np.pi / 2.0, 0.0)        # cos(p) == sin(p + pi/2)
    wx = (seg == 0).astype(np.float64)              # x-segment weight
    wy = (seg == 1).astype(np.float64)              # y-segment weight
    ph_z = z.astype(np.float64) * inv_freq          # z values are lane-only:
    base = np.where(seg == 2,                       # precompute them fully
                    np.where(is_cos, np.cos(ph_z), np.sin(ph_z)), 0.0)

    def dev(a):
        return jnp.asarray(a.reshape(1, 1, Lz), dtype=jnp.float32)

    return dev(fx), dev(fy), dev(off), dev(wx), dev(wy), dev(base)


def _pe3d_kernel_factory(tx, ty, out_dtype):
    def kernel(fx_ref, fy_ref, off_ref, wx_ref, wy_ref, base_ref, o_ref):
        fx = fx_ref[...]          # (1, 1, Lz)
        fy = fy_ref[...]
        off = off_ref[...]
        wx = wx_ref[...]
        wy = wy_ref[...]
        base = base_ref[...]

        x0 = pl.program_id(0) * tx
        y0 = pl.program_id(1) * ty
        xf = (lax.broadcasted_iota(jnp.int32, (tx, 1, 1), 0) + x0).astype(jnp.float32)
        yf = (lax.broadcasted_iota(jnp.int32, (1, ty, 1), 1) + y0).astype(jnp.float32)

        # sin/cos of the x- and y-phases; frequencies are zero outside their
        # segment and the weights zero the unused lanes afterwards.
        val_x = jnp.sin(xf * fx + off) * wx          # (tx, 1, Lz)
        val_y = jnp.sin(yf * fy + off) * wy          # (1, ty, Lz)
        val = val_x + val_y + base                   # (tx, ty, Lz)

        # Single lane-dense full-block store.
        o_ref[...] = val.astype(out_dtype)

    return kernel


def _pick_tiles(X, Y, row_bytes, budget_bytes=2 << 20):
    """Choose (tx, ty) so the (tx, ty, Z*ch) block stays near `budget_bytes`."""
    # ty: the full Y extent if it fits, else the largest multiple-of-8 divisor.
    if Y * row_bytes <= budget_bytes:
        ty = Y
    else:
        ty = None
        cap = min(Y, max(8, budget_bytes // max(row_bytes, 1)))
        t = (cap // 8) * 8
        while t >= 8:
            if Y % t == 0:
                ty = t
                break
            t -= 8
        if ty is None:
            ty = Y  # fallback: no legal smaller tile on this axis
    tile_row_bytes = ty * row_bytes
    tx = 1
    for t in range(1, X + 1):
        if X % t == 0 and t * tile_row_bytes <= budget_bytes:
            tx = t
    return tx, ty


def _pe3d_slab(X, Y, Z, orig_ch, C, out_dtype):
    Lz = Z * orig_ch
    itemsize = jnp.dtype(out_dtype).itemsize
    tx, ty = _pick_tiles(X, Y, Lz * itemsize)
    grid = (X // tx, Y // ty)
    tables = _lane_tables(Z, C, orig_ch)

    block_bytes = tx * ty * Lz * itemsize
    extra = {}
    # ~3 live full-tile temporaries + double-buffered output block.
    need = 5 * block_bytes + (1 << 20)
    if need > (16 << 20):
        # Keep below v7x's 64 MiB physical VMEM.
        extra["vmem_limit_bytes"] = int(min(need, 48 << 20))

    lane_spec = pl.BlockSpec((1, 1, Lz), lambda i, j: (0, 0, 0))
    flat = pl.pallas_call(
        _pe3d_kernel_factory(tx, ty, out_dtype),
        out_shape=jax.ShapeDtypeStruct((X, Y, Lz), out_dtype),
        grid=grid,
        in_specs=[lane_spec] * 6,
        out_specs=pl.BlockSpec((tx, ty, Lz), lambda i, j: (i, j, 0)),
        compiler_params=pltpu.CompilerParams(
            dimension_semantics=("parallel", "parallel"), **extra),
    )(*tables)
    return flat.reshape(X, Y, Z, orig_ch)


class PositionalEncoding3D:
    """JAX/Pallas port of the PyTorch PositionalEncoding3D module."""

    def __init__(self, channels):
        c = int(np.ceil(channels / 6) * 2)
        if c % 2:
            c += 1
        self.channels = c  # internal per-axis channel count

    def __call__(self, tensor):
        if tensor.ndim != 5:
            raise RuntimeError('The input tensor has to be 5d!')
        B, X, Y, Z, orig_ch = tensor.shape
        out_dtype = tensor.dtype
        slab = _pe3d_slab(X, Y, Z, orig_ch, self.channels, out_dtype)
        # Encoding is batch-independent: broadcast lazily instead of writing
        # B identical copies from the kernel.
        return jnp.broadcast_to(slab[None], (B, X, Y, Z, orig_ch))


def _reference(B, X, Y, Z, orig_ch, C, dtype):
    """Pure-numpy replica of the PyTorch forward for verification."""
    inv_freq = 1.0 / (10000.0 ** (np.arange(0, C, 2).astype(np.float64) / C))

    def emb(dim):
        phase = np.einsum('i,j->ij', np.arange(dim, dtype=np.float64), inv_freq)
        return np.concatenate([np.sin(phase), np.cos(phase)], axis=-1)

    full = np.zeros((X, Y, Z, 3 * C), np.float64)
    full[..., :C] = emb(X)[:, None, None, :]
    full[..., C:2 * C] = emb(Y)[None, :, None, :]
    full[..., 2 * C:] = emb(Z)[None, None, :, :]
    out = np.broadcast_to(full[None, ..., :orig_ch], (B, X, Y, Z, orig_ch))
    return np.ascontiguousarray(out).astype(dtype)


if __name__ == "__main__":
    # Small shapes: batch=2, x=4, y=8, z=8, ch=10
    # (ch=10 -> internal C=4, so the z-segment is truncated, exercising the
    #  same emb[..., :orig_ch] path as the PyTorch code).
    B, X, Y, Z, CH = 2, 4, 8, 8, 10
    key = jax.random.PRNGKey(0)
    x = jax.random.normal(key, (B, X, Y, Z, CH), dtype=jnp.float32)

    module = PositionalEncoding3D(CH)
    out = module(x)
    out = jax.block_until_ready(out)

    ref = _reference(B, X, Y, Z, CH, module.channels, np.float32)
    np.testing.assert_allclose(np.asarray(out), ref, rtol=1e-5, atol=1e-5)
    print("KERNEL_OK")
</pallas_src>

<mosaic_0001>
module attributes {stable_mosaic.version = 11 : i64} {
  func.func @kernel(%arg0: i32, %arg1: i32, %arg2: memref<1x1x80xf32, #tpu.memory_space<vmem>>, %arg3: memref<1x1x80xf32, #tpu.memory_space<vmem>>, %arg4: memref<1x1x80xf32, #tpu.memory_space<vmem>>, %arg5: memref<1x1x80xf32, #tpu.memory_space<vmem>>, %arg6: memref<1x1x80xf32, #tpu.memory_space<vmem>>, %arg7: memref<1x1x80xf32, #tpu.memory_space<vmem>>, %arg8: memref<4x8x80xf32, #tpu.memory_space<vmem>>) attributes {dimension_semantics = [#tpu.dimension_semantics<parallel>, #tpu.dimension_semantics<parallel>], iteration_bounds = array<i64: 1, 1>, scalar_prefetch = 0 : i64, scratch_operands = 0 : i64, tpu.core_type = #tpu.core_type<tc>, window_params = [{pipeline_mode = #tpu.pipeline_mode<synchronous>, transform_indices = @transform_0, window_bounds = array<i64: 1, 1, 80>}, {pipeline_mode = #tpu.pipeline_mode<synchronous>, transform_indices = @transform_1, window_bounds = array<i64: 1, 1, 80>}, {pipeline_mode = #tpu.pipeline_mode<synchronous>, transform_indices = @transform_2, window_bounds = array<i64: 1, 1, 80>}, {pipeline_mode = #tpu.pipeline_mode<synchronous>, transform_indices = @transform_3, window_bounds = array<i64: 1, 1, 80>}, {pipeline_mode = #tpu.pipeline_mode<synchronous>, transform_indices = @transform_4, window_bounds = array<i64: 1, 1, 80>}, {pipeline_mode = #tpu.pipeline_mode<synchronous>, transform_indices = @transform_5, window_bounds = array<i64: 1, 1, 80>}, {transform_indices = @transform_6, window_bounds = array<i64: 4, 8, 80>}]} {
    %c0 = arith.constant 0 : index
    %c0_0 = arith.constant 0 : index
    %c0_1 = arith.constant 0 : index
    %0 = vector.load %arg2[%c0, %c0_0, %c0_1] : memref<1x1x80xf32, #tpu.memory_space<vmem>>, vector<1x1x80xf32>
    %c0_2 = arith.constant 0 : index
    %c0_3 = arith.constant 0 : index
    %c0_4 = arith.constant 0 : index
    %1 = vector.load %arg3[%c0_2, %c0_3, %c0_4] : memref<1x1x80xf32, #tpu.memory_space<vmem>>, vector<1x1x80xf32>
    %c0_5 = arith.constant 0 : index
    %c0_6 = arith.constant 0 : index
    %c0_7 = arith.constant 0 : index
    %2 = vector.load %arg4[%c0_5, %c0_6, %c0_7] : memref<1x1x80xf32, #tpu.memory_space<vmem>>, vector<1x1x80xf32>
    %c0_8 = arith.constant 0 : index
    %c0_9 = arith.constant 0 : index
    %c0_10 = arith.constant 0 : index
    %3 = vector.load %arg5[%c0_8, %c0_9, %c0_10] : memref<1x1x80xf32, #tpu.memory_space<vmem>>, vector<1x1x80xf32>
    %c0_11 = arith.constant 0 : index
    %c0_12 = arith.constant 0 : index
    %c0_13 = arith.constant 0 : index
    %4 = vector.load %arg6[%c0_11, %c0_12, %c0_13] : memref<1x1x80xf32, #tpu.memory_space<vmem>>, vector<1x1x80xf32>
    %c0_14 = arith.constant 0 : index
    %c0_15 = arith.constant 0 : index
    %c0_16 = arith.constant 0 : index
    %5 = vector.load %arg7[%c0_14, %c0_15, %c0_16] : memref<1x1x80xf32, #tpu.memory_space<vmem>>, vector<1x1x80xf32>
    %c4_i32 = arith.constant 4 : i32
    %6 = arith.muli %arg0, %c4_i32 : i32
    %c8_i32 = arith.constant 8 : i32
    %7 = arith.muli %arg1, %c8_i32 : i32
    %8 = tpu.iota {dimensions = array<i32: 0>} : vector<4x1x1xi32>
    %9 = vector.broadcast %6 : i32 to vector<4x1x1xi32>
    %10 = arith.addi %8, %9 : vector<4x1x1xi32>
    %11 = arith.sitofp %10 : vector<4x1x1xi32> to vector<4x1x1xf32>
    %12 = tpu.iota {dimensions = array<i32: 1>} : vector<1x8x1xi32>
    %13 = vector.broadcast %7 : i32 to vector<1x8x1xi32>
    %14 = arith.addi %12, %13 : vector<1x8x1xi32>
    %15 = arith.sitofp %14 : vector<1x8x1xi32> to vector<1x8x1xf32>
    %16 = vector.broadcast %11 : vector<4x1x1xf32> to vector<4x1x80xf32>
    %17 = vector.broadcast %0 : vector<1x1x80xf32> to vector<4x1x80xf32>
    %18 = arith.mulf %16, %17 : vector<4x1x80xf32>
    %19 = vector.broadcast %2 : vector<1x1x80xf32> to vector<4x1x80xf32>
    %20 = arith.addf %18, %19 : vector<4x1x80xf32>
    %21 = math.sin %20 : vector<4x1x80xf32>
    %22 = vector.broadcast %3 : vector<1x1x80xf32> to vector<4x1x80xf32>
    %23 = arith.mulf %21, %22 : vector<4x1x80xf32>
    %24 = vector.broadcast %15 : vector<1x8x1xf32> to vector<1x8x80xf32>
    %25 = vector.broadcast %1 : vector<1x1x80xf32> to vector<1x8x80xf32>
    %26 = arith.mulf %24, %25 : vector<1x8x80xf32>
    %27 = vector.broadcast %2 : vector<1x1x80xf32> to vector<1x8x80xf32>
    %28 = arith.addf %26, %27 : vector<1x8x80xf32>
    %29 = math.sin %28 : vector<1x8x80xf32>
    %30 = vector.broadcast %4 : vector<1x1x80xf32> to vector<1x8x80xf32>
    %31 = arith.mulf %29, %30 : vector<1x8x80xf32>
    %32 = vector.broadcast %23 : vector<4x1x80xf32> to vector<4x8x80xf32>
    %33 = vector.broadcast %31 : vector<1x8x80xf32> to vector<4x8x80xf32>
    %34 = arith.addf %32, %33 : vector<4x8x80xf32>
    %35 = vector.broadcast %5 : vector<1x1x80xf32> to vector<4x8x80xf32>
    %36 = arith.addf %34, %35 : vector<4x8x80xf32>
    %c0_17 = arith.constant 0 : index
    %c0_18 = arith.constant 0 : index
    %c0_19 = arith.constant 0 : index
    %37 = vector.load %arg8[%c0_17, %c0_18, %c0_19] : memref<4x8x80xf32, #tpu.memory_space<vmem>>, vector<4x8x80xf32>
    tpu.vector_store %arg8[%c0_17, %c0_18, %c0_19], %36 {strides = array<i32>} : memref<4x8x80xf32, #tpu.memory_space<vmem>>, vector<4x8x80xf32>,
    return
  }
  func.func @transform_0(%arg0: i32, %arg1: i32) -> (i32, i32, i32) {
    %c0_i32 = arith.constant 0 : i32
    %c0_i32_0 = arith.constant 0 : i32
    %c0_i32_1 = arith.constant 0 : i32
    %c0_i32_2 = arith.constant 0 : i32
    return %c0_i32, %c0_i32_0, %c0_i32_1 : i32, i32, i32
  }
  func.func @transform_1(%arg0: i32, %arg1: i32) -> (i32, i32, i32) {
    %c0_i32 = arith.constant 0 : i32
    %c0_i32_0 = arith.constant 0 : i32
    %c0_i32_1 = arith.constant 0 : i32
    %c0_i32_2 = arith.constant 0 : i32
    return %c0_i32, %c0_i32_0, %c0_i32_1 : i32, i32, i32
  }
  func.func @transform_2(%arg0: i32, %arg1: i32) -> (i32, i32, i32) {
    %c0_i32 = arith.constant 0 : i32
    %c0_i32_0 = arith.constant 0 : i32
    %c0_i32_1 = arith.constant 0 : i32
    %c0_i32_2 = arith.constant 0 : i32
    return %c0_i32, %c0_i32_0, %c0_i32_1 : i32, i32, i32
  }
  func.func @transform_3(%arg0: i32, %arg1: i32) -> (i32, i32, i32) {
    %c0_i32 = arith.constant 0 : i32
    %c0_i32_0 = arith.constant 0 : i32
    %c0_i32_1 = arith.constant 0 : i32
    %c0_i32_2 = arith.constant 0 : i32
    return %c0_i32, %c0_i32_0, %c0_i32_1 : i32, i32, i32
  }
  func.func @transform_4(%arg0: i32, %arg1: i32) -> (i32, i32, i32) {
    %c0_i32 = arith.constant 0 : i32
    %c0_i32_0 = arith.constant 0 : i32
    %c0_i32_1 = arith.constant 0 : i32
    %c0_i32_2 = arith.constant 0 : i32
    return %c0_i32, %c0_i32_0, %c0_i32_1 : i32, i32, i32
  }
  func.func @transform_5(%arg0: i32, %arg1: i32) -> (i32, i32, i32) {
    %c0_i32 = arith.constant 0 : i32
    %c0_i32_0 = arith.constant 0 : i32
    %c0_i32_1 = arith.constant 0 : i32
    %c0_i32_2 = arith.constant 0 : i32
    return %c0_i32, %c0_i32_0, %c0_i32_1 : i32, i32, i32
  }
  func.func @transform_6(%arg0: i32, %arg1: i32) -> (i32, i32, i32) {
    %c0_i32 = arith.constant 0 : i32
    %c0_i32_0 = arith.constant 0 : i32
    return %arg0, %arg1, %c0_i32 : i32, i32, i32
  }
}

</mosaic_0001>

<bundles_post_ra>
// kernel: tpu_custom_call.1
= control target key start
LH: loop header
LB: loop body
LE: loop exit
PB: predicated region body
PF: predicated region fallthrough
CT: control target
= control target key end

     0   :  { %11 = vsyncpa [#allocation3], 0  ;;  %s1292_s0 = inlined_call_operand.hbm [shape: f32[1,1,80], index: 0, kind: input, shape index: {}]   ;;  %s1293_s1 = inlined_call_operand.vmem [shape: f32[1,1,80], index: 1, kind: input, shape index: {}]   ;;  %s1294_s2 = inlined_call_operand.vmem [shape: f32[1,1,80], index: 2, kind: input, shape index: {}]   ;;  %s1295_s3 = inlined_call_operand.vmem [shape: f32[1,1,80], index: 3, kind: input, shape index: {}]   ;;  %s1296_s4 = inlined_call_operand.vmem [shape: f32[1,1,80], index: 4, kind: input, shape index: {}]   ;;  %s1297_s5 = inlined_call_operand.vmem [shape: f32[1,1,80], index: 5, kind: input, shape index: {}]   ;;  %s1298_s6 = inlined_call_operand.hbm [shape: f32[4,8,80], index: 6, kind: output, shape index: {}]  }
   0x1   :  { %12 = vsyncpa [#allocation4], 0  ;;  %s791_s21 = smov [#allocation2]   ;;  %s743_s25 = scalar_lea.hbm %s1292_s0, 16 }
   0x2   :  { %s19_s22 = sshll.u32 %s791_s21, 4  ;;  %p744_p0 = scmp.ne.s32.totalorder %s1292_s0, %s743_s25  ;;  %s20_s22 = int_to_ptr.vmem [resolvable:$true] %s19_s22 }
   0x3   :  { %p747_p1 = scmp.lt.u32.totalorder %s743_s25, %s1292_s0 }
   0x5   :  { %p749_p2 = pnand %p747_p1, %p744_p0 }
   0x7   :  { %752 = shalt.err (!%p749_p2)
}
   0x8   :  { %s753_s30 = scalar_lea.vmem %s20_s22, 16  ;;  %s757_s7 = scalar_lea.vmem %s20_s22, 32 }
   0x9   :  { %p754_p3 = scmp.ne.s32.totalorder %s20_s22, %s753_s30  ;;  %p758_p4 = scmp.lt.s32.totalorder %s20_s22, %s20_s22 }
   0xa   :  { %p759_p5 = scmp.lt.s32.totalorder %s757_s7, %s753_s30 }
   0xc   :  { %p760_p6 = por %p759_p5, %p758_p4 }
   0xe   :  { %p761_p7 = pnand %p760_p6, %p754_p3 }
  0x10   :  { %764 = shalt.err (!%p761_p7)
}
  0x11   :  { %22 = dma.hbm_to_vmem [thread:$0]  %s1292_s0, 16, %s20_s22, [#allocation3]  }
  0x12   :  { %787 = dma.done.wait [#allocation3], 16  }
  0x13   :  { %788 = vsyncadd [#allocation3], 4294967280  ;;  %v848_v0 = vld [vmem:[#allocation2] sm:$0x1]  ;;  %v792_v33 = vmov 683565275  }
  0x14   :  { %v853_v1 = vld [vmem:[%s1294_s2] sm:$0x1]  ;;  %v57_v3 = vmul.f32 0.0, %v848_v0  ;;  %v59_v4 = vmul.f32 2.0, %v848_v0  ;;  %v793_v35 = vmov 2475754826  }
  0x15   :  { %v857_v2 = vadd.f32 %v853_v1, %v848_v0  ;;  %v794_v38 = vmov 2131351028   ;;  %v795_v41 = vmov 2102212464   ;;  %v796_v48 = vmov 920167782  }
  0x16   :  { %v863_v6 = vadd.f32 %v57_v3, %v853_v1  ;;  %v866_v7 = vadd.f32 %v59_v4, %v853_v1  ;;  %v797_v56 = vmov 1326507024   ;;  %s798_s14 = smov [#allocation5]  }
  0x17   :  { %v172_v5 = vand.u32 2139095040, %v857_v2  ;;  %v169_v11 = vand.u32 2147483647, %v857_v2  ;;  %s658_s15 = sshll.u32 %s798_s14, 4  ;;  %s659_s15 = int_to_ptr.vmem [resolvable:$true] %s658_s15 }
  0x18   :  { %v65_v9 = vand.u32 2147483647, %v863_v6  ;;  %v68_v10 = vand.u32 2139095040, %v863_v6  ;;  %v276_v15 = vand.u32 2139095040, %v866_v7  ;;  %p770_p9 = scmp.lt.s32.totalorder %s659_s15, %s659_s15 }
  0x19   :  { %v173_v8 = vshrl.u32 %v172_v5, 23  ;;  %v876_v19 = vand.u32 8388607, %v169_v11 }
  0x1a   :  { %v69_v13 = vshrl.u32 %v68_v10, 23  ;;  %v72_v14 = vand.u32 8388607, %v65_v9  ;;  %v277_v20 = vshrl.u32 %v276_v15, 23 }
  0x1b   :  { %v674_v12 = vadd.s32 4294967169, %v173_v8  ;;  %v177_v26 = vor.u32 8388608, %v876_v19 }
  0x1c   :  { %v670_v17 = vadd.s32 4294967169, %v69_v13  ;;  %v73_v18 = vor.u32 8388608, %v72_v14  ;;  %v678_v23 = vadd.s32 4294967169, %v277_v20 }
  0x1d   :  { %v179_v16 = vadd.s32 1, %v674_v12 }
  0x1e   :  { %v75_v21 = vadd.s32 1, %v670_v17  ;;  %v878_v25 = vshll.u32 %v73_v18, 8  ;;  %v885_v30 = vadd.s32 1, %v678_v23 }
  0x1f   :  { %vm180_vm0 = vcmp.gt.s32.totalorder %v179_v16, 0 }
  0x20   :  { %v181_v22 = vsel %vm180_vm0, %v179_v16, 0  ;;  %vm76_vm1 = vcmp.gt.s32.totalorder %v75_v21, 0  ;;  %vm284_vm10 = vcmp.gt.s32.totalorder %v885_v30, 0 }
  0x21   :  { %v183_v24 = vand.u32 31, %v181_v22  ;;  %v77_v27 = vsel %vm76_vm1, %v75_v21, 0  ;;  %v881_v28 = vshrl.u32 %v181_v22, 5 }
  0x22   :  { %v78_v31 = vshrl.u32 %v77_v27, 5  ;;  %v79_v32 = vand.u32 31, %v77_v27 }
  0x23   :  { %v883_v29 = vsub.s32 32, %v183_v24  ;;  %v186_v34 = vshll.u32 %v792_v33, %v183_v24  ;;  %v189_v36 = vshll.u32 %v793_v35, %v183_v24  ;;  %v192_v40 = vshll.u32 %v794_v38, %v183_v24 }
  0x24   :  { %v195_v42 = vshll.u32 %v795_v41, %v183_v24  ;;  %v80_v43 = vsub.s32 32, %v79_v32  ;;  %v82_v44 = vshll.u32 %v792_v33, %v79_v32  ;;  %v85_v45 = vshll.u32 %v793_v35, %v79_v32 }
  0x25   :  { %v187_v37 = vshrl.u32 %v793_v35, %v883_v29  ;;  %v190_v39 = vshrl.u32 %v794_v38, %v883_v29  ;;  %v88_v46 = vshll.u32 %v794_v38, %v79_v32  ;;  %v91_v47 = vshll.u32 %v795_v41, %v79_v32 }
  0x26   :  { %v94_v49 = vshll.u32 %v796_v48, %v79_v32  ;;  %vm97_vm2 = vcmp.lt.s32.totalorder %v78_v31, 1  ;;  %v193_v50 = vshrl.u32 %v795_v41, %v883_v29  ;;  %v81_v51 = vshrl.u32 %v792_v33, %v80_v43 }
  0x27   :  { %v83_v52 = vshrl.u32 %v793_v35, %v80_v43  ;;  %v86_v53 = vshrl.u32 %v794_v38, %v80_v43  ;;  %v89_v54 = vshrl.u32 %v795_v41, %v80_v43  ;;  %v92_v55 = vshrl.u32 %v796_v48, %v80_v43 }
  0x28   :  { %v95_v57 = vshrl.u32 %v797_v56, %v80_v43  ;;  %vm98_vm3 = vcmp.lt.s32.totalorder %v78_v31, 2  ;;  %vm99_vm4 = vcmp.lt.s32.totalorder %v78_v31, 3  ;;  %vm100_vm5 = vcmp.lt.s32.totalorder %v78_v31, 4 }
  0x29   :  { %v84_v58 = vor.u32 %v83_v52, %v82_v44  ;;  %v87_v59 = vor.u32 %v86_v53, %v85_v45  ;;  %v90_v60 = vor.u32 %v89_v54, %v88_v46  ;;  %v93_v61 = vor.u32 %v92_v55, %v91_v47 }
  0x2a   :  { %v96_v62 = vor.u32 %v95_v57, %v94_v49  ;;  %v188_v63 = vor.u32 %v187_v37, %v186_v34  ;;  %v191_v3 = vor.u32 %v190_v39, %v189_v36  ;;  %v196_v15 = vshrl.u32 %v796_v48, %v883_v29 }
  0x2b   :  { %v101_v4 = vsel %vm97_vm2, %v81_v51, %v84_v58  ;;  %v102_v5 = vsel %vm100_vm5, %v90_v60, 2102212464  ;;  %v105_v8 = vsel %vm97_vm2, %v84_v58, %v87_v59  ;;  %v109_v10 = vsel %vm97_vm2, %v87_v59, %v90_v60 }
  0x2c   :  { %v103_v12 = vsel %vm99_vm4, %v87_v59, %v102_v5  ;;  %v106_v13 = vsel %vm100_vm5, %v93_v61, 920167782  ;;  %v110_v14 = vsel %vm100_vm5, %v96_v62, 1326507024  ;;  %v194_v19 = vor.u32 %v193_v50, %v192_v40 }
  0x2d   :  { %v104_v16 = vsel %vm98_vm3, %v101_v4, %v103_v12  ;;  %v107_v17 = vsel %vm99_vm4, %v90_v60, %v106_v13  ;;  %v111_v18 = vsel %vm99_vm4, %v93_v61, %v110_v14  ;;  %v197_v22 = vor.u32 %v196_v15, %v195_v42 }
  0x2e   :  { %v108_v20 = vsel %vm98_vm3, %v105_v8, %v107_v17  ;;  %v112_v21 = vsel %vm98_vm3, %v109_v10, %v111_v18  ;;  %v198_v23 = vshll.u32 %v796_v48, %v183_v24  ;;  %v199_v37 = vshrl.u32 %v797_v56, %v883_v29 }
  0x2f   :  { %v921_v27 = vmul.u32.u64.low %v878_v25, %v112_v21  ;;  %v922_v32 = vmul.u32.u64.high %v878_v25, %v112_v21, %v921_v27  ;;  %v925_v34 = vmul.u32.u64.low %v878_v25, %v108_v20  ;;  %v926_v36 = vmul.u32.u64.high %v878_v25, %v108_v20, %v925_v34 }
  0x30   :  { %vm201_vm6 = vcmp.lt.s32.totalorder %v881_v28, 1  ;;  %v932_v39 = vshll.u32 %v177_v26, 8  ;;  %v120_v31 = vmul.u32 %v878_v25, %v104_v16  ;;  %vm202_vm7 = vcmp.lt.s32.totalorder %v881_v28, 2 }
  0x31   :  { %vm203_vm8 = vcmp.lt.s32.totalorder %v881_v28, 3  ;;  %vm204_vm9 = vcmp.lt.s32.totalorder %v881_v28, 4  ;;  %v200_v24 = vor.u32 %v199_v37, %v198_v23  ;;  %v209_v40 = vsel %vm201_vm6, %v188_v63, %v191_v3 }
  0x32   :  { %v210_v42 = vsel %vm204_vm9, %v197_v22, 920167782  ;;  %vm122_vm11 = vc.u32 %v922_v32, %v925_v34  ;;  %v123_v25 = vadd.s32 1, %v926_v36  ;;  %v213_v26 = vsel %vm201_vm6, %v191_v3, %v194_v19 }
  0x33   :  { %v211_v43 = vsel %vm203_vm8, %v194_v19, %v210_v42  ;;  %v214_v44 = vsel %vm204_vm9, %v200_v24, 1326507024  ;;  %v273_v45 = vand.u32 2147483647, %v866_v7  ;;  %v285_v46 = vsel %vm284_vm10, %v885_v30, 0 }
  0x34   :  { %v124_v47 = vsel %vm122_vm11, %v123_v25, %v926_v36  ;;  %v185_v49 = vshrl.u32 %v792_v33, %v883_v29  ;;  %v212_v50 = vsel %vm202_vm7, %v209_v40, %v211_v43  ;;  %v215_v51 = vsel %vm203_vm8, %v197_v22, %v214_v44 }
  0x35   :  { %v125_v52 = vadd.s32 %v124_v47, %v120_v31  ;;  %v216_v53 = vsel %vm202_vm7, %v213_v26, %v215_v51  ;;  %v964_v54 = vmul.u32.u64.low %v932_v39, %v212_v50  ;;  %v965_v55 = vmul.u32.u64.high %v932_v39, %v212_v50, %v964_v54 }
  0x36   :  { %v206_v30 = vsel %vm204_vm9, %v194_v19, 2102212464  ;;  %v971_v29 = vmul.u32.u64.low %v932_v39, %v216_v53  ;;  %v972_v57 = vmul.u32.u64.high %v932_v39, %v216_v53, %v971_v29  ;;  %v287_v58 = vand.u32 31, %v285_v46 }
  0x37   :  { %v126_v60 = vadd.s32 536870912, %v125_v52  ;;  %v205_v61 = vsel %vm201_vm6, %v185_v49, %v188_v63  ;;  %v207_v62 = vsel %vm203_vm8, %v191_v3, %v206_v30  ;;  %v60_v4 = vmul.f32 3.0, %v848_v0 }
  0x38   :  { %v288_v59 = vsub.s32 32, %v287_v58  ;;  %v280_v5 = vand.u32 8388607, %v273_v45  ;;  %v290_v8 = vshll.u32 %v792_v33, %v287_v58  ;;  %v293_v12 = vshll.u32 %v793_v35, %v287_v58 }
  0x39   :  { %v208_v14 = vsel %vm202_vm7, %v205_v61, %v207_v62  ;;  %v286_v63 = vshrl.u32 %v285_v46, 5  ;;  %v299_v15 = vshll.u32 %v795_v41, %v287_v58  ;;  %v989_v0 = vshrl.u32 %v126_v60, 30 }
  0x3a   :  { %v291_v10 = vshrl.u32 %v793_v35, %v288_v59  ;;  %v294_v13 = vshrl.u32 %v794_v38, %v288_v59  ;;  %v300_v3 = vshrl.u32 %v796_v48, %v288_v59  ;;  %v227_v16 = vadd.s32 1, %v965_v55 }
  0x3b   :  { %v296_v17 = vshll.u32 %v794_v38, %v287_v58  ;;  %v297_v18 = vshrl.u32 %v795_v41, %v288_v59  ;;  %vm226_vm12 = vc.u32 %v972_v57, %v964_v54  ;;  %v302_v19 = vshll.u32 %v796_v48, %v287_v58 }
  0x3c   :  { %v303_v28 = vshrl.u32 %v797_v56, %v288_v59  ;;  %v999_v20 = vadd.f32 %v60_v4, %v853_v1  ;;  %v281_v21 = vor.u32 8388608, %v280_v5  ;;  %v292_v22 = vor.u32 %v291_v10, %v290_v8 }
  0x3d   :  { %v295_v23 = vor.u32 %v294_v13, %v293_v12  ;;  %v224_v27 = vmul.u32 %v932_v39, %v208_v14  ;;  %v301_v36 = vor.u32 %v300_v3, %v299_v15  ;;  %vm305_vm13 = vcmp.lt.s32.totalorder %v286_v63, 1 }
  0x3e   :  { %v128_v37 = vshll.u32 %v989_v0, 30  ;;  %v228_v31 = vsel %vm226_vm12, %v227_v16, %v965_v55  ;;  %v298_v24 = vor.u32 %v297_v18, %v296_v17  ;;  %vm308_vm14 = vcmp.lt.s32.totalorder %v286_v63, 4 }
  0x3f   :  { %v304_v40 = vor.u32 %v303_v28, %v302_v19  ;;  %vm307_vm15 = vcmp.lt.s32.totalorder %v286_v63, 3  ;;  %vm306_vm0 = vcmp.lt.s32.totalorder %v286_v63, 2  ;;  %v313_v42 = vsel %vm305_vm13, %v292_v22, %v295_v23  ;;  %v686_v28 = vld [vmem:[%s1293_s1] ss:$0 sm:$0xff] }
  0x40   :  { %v321_v25 = vshll.u32 %v281_v21, 8  ;;  %v380_v26 = vand.u32 2139095040, %v999_v20  ;;  %v229_v43 = vadd.s32 %v228_v31, %v224_v27  ;;  %v289_v44 = vshrl.u32 %v792_v33, %v288_v59 }
  0x41   :  { %v314_v39 = vsel %vm308_vm14, %v301_v36, 920167782  ;;  %v1008_v46 = vsub.s32 %v125_v52, %v128_v37  ;;  %v310_v47 = vsel %vm308_vm14, %v298_v24, 2102212464  ;;  %v317_v50 = vsel %vm305_vm13, %v295_v23, %v298_v24 }
  0x42   :  { %v315_v49 = vsel %vm307_vm15, %v298_v24, %v314_v39  ;;  %v52_v51 = vlaneseq  ;;  %v318_v55 = vsel %vm308_vm14, %v304_v40, 1326507024  ;;  %v381_v59 = vshrl.u32 %v380_v26, 23 }
  0x43   :  { %v316_v53 = vsel %vm306_vm0, %v313_v42, %v315_v49  ;;  %v319_v30 = vsel %vm307_vm15, %v301_v36, %v318_v55  ;;  %v230_v52 = vadd.s32 536870912, %v229_v43  ;;  %v309_v60 = vsel %vm305_vm13, %v289_v44, %v292_v22 }
  0x44   :  { %v1016_v29 = vmul.u32.u64.low %v321_v25, %v316_v53  ;;  %v1017_v58 = vmul.u32.u64.high %v321_v25, %v316_v53, %v1016_v29  ;;  %v311_v61 = vsel %vm307_vm15, %v295_v23, %v310_v47  ;;  %v320_v62 = vsel %vm306_vm0, %v317_v50, %v319_v30 }
  0x45   :  { %v131_v4 = vsub.s32 0, %v1008_v46  ;;  %v312_v5 = vsel %vm306_vm0, %v309_v60, %v311_v61  ;;  %v1025_v8 = vmul.u32.u64.low %v321_v25, %v320_v62  ;;  %v1026_v10 = vmul.u32.u64.high %v321_v25, %v320_v62, %v1025_v8 }
  0x46   :  { %v53_v12 = vshrl.u32 %v52_v51, 7  ;;  %v1028_v13 = vshrl.u32 %v230_v52, 30  ;;  %v682_v14 = vadd.s32 4294967169, %v381_v59  ;;  %v331_v3 = vadd.s32 1, %v1017_v58 }
  0x47   :  { %v671_v15 = vmin.u32 %v131_v4, %v1008_v46  ;;  %v328_v16 = vmul.u32 %v321_v25, %v312_v5  ;;  %vm330_vm1 = vc.u32 %v1026_v10, %v1016_v29  ;;  %v377_v25 = vand.u32 2147483647, %v999_v20 }
  0x48   :  { %v387_v17 = vadd.s32 1, %v682_v14  ;;  %v56_v18 = vcvt.s32.f32 %v53_v12  ;;  %v232_v19 = vshll.u32 %v1028_v13, 30  ;;  %v1035_v63 = vsub.s32 0, %v53_v12 }
  0x49   :  { %v133_v21 = vclz %v671_v15  ;;  %v332_v22 = vsel %vm330_vm1, %v331_v3, %v1017_v58 }
  0x4a   :  { %vm388_vm2 = vcmp.gt.s32.totalorder %v387_v17, 0  ;;  %v333_v23 = vadd.s32 %v332_v22, %v328_v16  ;;  %v1041_v37 = vsub.s32 %v229_v43, %v232_v19  ;;  %v491_v24 = vmul.f32 %v686_v28, %v56_v18 }
  0x4b   :  { %v389_v27 = vsel %vm388_vm2, %v387_v17, 0  ;;  %v496_v40 = vrot.slane %v853_v1, %v1035_v63  ;;  %v672_v42 = vadd.s32 4294967294, %v133_v21  ;;  %v384_v43 = vand.u32 8388607, %v377_v25 }
  0x4c   :  { %v391_v36 = vand.u32 31, %v389_v27  ;;  %v334_v31 = vadd.s32 536870912, %v333_v23  ;;  %v235_v39 = vsub.s32 0, %v1041_v37  ;;  %v390_v50 = vshrl.u32 %v389_v27, 5 }
  0x4d   :  { %v1050_v49 = vadd.f32 %v496_v40, %v491_v24  ;;  %vm673_vm3 = vcmp.lt.s32.totalorder %v672_v42, 0  ;;  %v385_v8 = vor.u32 8388608, %v384_v43  ;;  %vm67_vm2 = vcmp.lt.s32.totalorder %v863_v6, 0 }
  0x4e   :  { %v1046_v26 = vshrl.u32 %v334_v31, 30  ;;  %v392_v44 = vsub.s32 32, %v391_v36  ;;  %v397_v51 = vshll.u32 %v793_v35, %v391_v36  ;;  %v400_v55 = vshll.u32 %v794_v38, %v391_v36 }
  0x4f   :  { %v394_v58 = vshll.u32 %v792_v33, %v391_v36  ;;  %v403_v52 = vshll.u32 %v795_v41, %v391_v36  ;;  %v675_v61 = vmin.u32 %v235_v39, %v1041_v37  ;;  %v406_v62 = vshll.u32 %v796_v48, %v391_v36 }
  0x50   :  { %v336_v47 = vshll.u32 %v1046_v26, 30  ;;  %v398_v53 = vshrl.u32 %v794_v38, %v392_v44  ;;  %v401_v30 = vshrl.u32 %v795_v41, %v392_v44  ;;  %v395_v59 = vshrl.u32 %v793_v35, %v392_v44 }
  0x51   :  { %v404_v60 = vshrl.u32 %v796_v48, %v392_v44  ;;  %v502_v4 = vand.u32 2139095040, %v1050_v49  ;;  %v407_v12 = vshrl.u32 %v797_v56, %v392_v44  ;;  %v136_v14 = vsel %vm673_vm3, 0, %v672_v42 }
  0x52   :  { %v1055_v1 = vsub.s32 %v333_v23, %v336_v47  ;;  %v399_v15 = vor.u32 %v398_v53, %v397_v51  ;;  %v402_v3 = vor.u32 %v401_v30, %v400_v55  ;;  %v396_v17 = vor.u32 %v395_v59, %v394_v58 }
  0x53   :  { %v405_v16 = vor.u32 %v404_v60, %v403_v52  ;;  %v408_v18 = vor.u32 %v407_v12, %v406_v62  ;;  %vm409_vm4 = vcmp.lt.s32.totalorder %v390_v50, 1  ;;  %vm412_vm5 = vcmp.lt.s32.totalorder %v390_v50, 4 }
  0x54   :  { %v339_v5 = vsub.s32 0, %v1055_v1  ;;  %v237_v19 = vclz %v675_v61  ;;  %vm411_vm6 = vcmp.lt.s32.totalorder %v390_v50, 3  ;;  %v503_v28 = vshrl.u32 %v502_v4, 23 }
  0x55   :  { %v141_v21 = vsub.s32 4294967266, %v136_v14  ;;  %v425_v23 = vshll.u32 %v385_v8, 8  ;;  %v393_v27 = vshrl.u32 %v792_v33, %v392_v44  ;;  %vm410_vm7 = vcmp.lt.s32.totalorder %v390_v50, 2 }
  0x56   :  { %v679_v22 = vmin.u32 %v339_v5, %v1055_v1  ;;  %v418_v36 = vsel %vm412_vm5, %v405_v16, 920167782  ;;  %v421_v31 = vsel %vm409_vm4, %v399_v15, %v402_v3  ;;  %v414_v24 = vsel %vm412_vm5, %v402_v3, 2102212464 }
  0x57   :  { %v417_v40 = vsel %vm409_vm4, %v396_v17, %v399_v15  ;;  %v419_v42 = vsel %vm411_vm6, %v402_v3, %v418_v36  ;;  %v422_v39 = vsel %vm412_vm5, %v408_v18, 1326507024  ;;  %v676_v47 = vadd.s32 4294967294, %v237_v19 }
  0x58   :  { %v423_v43 = vsel %vm411_vm6, %v405_v16, %v422_v39  ;;  %v687_v51 = vadd.s32 4294967169, %v503_v28  ;;  %v121_v53 = vadd.s32 %v925_v34, %v922_v32  ;;  %v137_v55 = vsub.s32 32, %v136_v14 }
  0x59   :  { %v341_v30 = vclz %v679_v22  ;;  %v424_v44 = vsel %vm410_vm7, %v421_v31, %v423_v43  ;;  %v142_v58 = vadd.s32 127, %v141_v21  ;;  %v413_v59 = vsel %vm409_vm4, %v393_v27, %v396_v17 }
  0x5a   :  { %v415_v52 = vsel %vm411_vm6, %v399_v15, %v414_v24  ;;  %v420_v60 = vsel %vm410_vm7, %v417_v40, %v419_v42  ;;  %v1082_v61 = vmul.u32.u64.low %v425_v23, %v424_v44  ;;  %v1083_v62 = vmul.u32.u64.high %v425_v23, %v424_v44, %v1082_v61 }
  0x5b   :  { %vm677_vm8 = vcmp.lt.s32.totalorder %v676_v47, 0  ;;  %v509_v4 = vadd.s32 1, %v687_v51  ;;  %v680_v5 = vadd.s32 4294967294, %v341_v30  ;;  %v416_v8 = vsel %vm410_vm7, %v413_v59, %v415_v52 }
  0x5c   :  { %v1086_v32 = vmul.u32.u64.low %v425_v23, %v420_v60  ;;  %v1087_v34 = vmul.u32.u64.high %v425_v23, %v420_v60, %v1086_v32  ;;  %v138_v12 = vshll.u32 %v1008_v46, %v136_v14  ;;  %v139_v3 = vshrl.u32 %v121_v53, %v137_v55 }
  0x5d   :  { %v143_v16 = vshll.u32 %v142_v58, 23  ;;  %vm510_vm9 = vcmp.gt.s32.totalorder %v509_v4, 0  ;;  %v1091_v15 = vsel %vm677_vm8, 0, %v676_v47  ;;  %v499_v17 = vand.u32 2147483647, %v1050_v49 }
  0x5e   :  { %v511_v18 = vsel %vm510_vm9, %v509_v4, 0  ;;  %v432_v19 = vmul.u32 %v425_v23, %v416_v8  ;;  %vm434_vm10 = vc.u32 %v1083_v62, %v1086_v32  ;;  %v225_v50 = vadd.s32 %v964_v54, %v972_v57 }
  0x5f   :  { %vm681_vm11 = vcmp.lt.s32.totalorder %v680_v5, 0  ;;  %v435_v28 = vadd.s32 1, %v1087_v34  ;;  %v513_v21 = vand.u32 31, %v511_v18  ;;  %v1099_v46 = vor.u32 %v139_v3, %v138_v12 }
  0x60   :  { %v1101_v14 = vor.u32 4788187, %v143_v16  ;;  %v245_v22 = vsub.s32 4294967266, %v1091_v15  ;;  %v329_v27 = vadd.s32 %v1016_v29, %v1026_v10  ;;  %v241_v23 = vsub.s32 32, %v1091_v15 }
  0x61   :  { %v436_v36 = vsel %vm434_vm10, %v435_v28, %v1087_v34  ;;  %v506_v54 = vand.u32 8388607, %v499_v17  ;;  %v514_v57 = vsub.s32 32, %v513_v21  ;;  %v1110_v31 = vsel %vm681_vm11, 0, %v680_v5 }
  0x62   :  { %v437_v24 = vadd.s32 %v436_v36, %v432_v19  ;;  %v516_v40 = vshll.u32 %v792_v33, %v513_v21  ;;  %v519_v42 = vshll.u32 %v793_v35, %v513_v21  ;;  %v242_v39 = vshll.u32 %v1041_v37, %v1091_v15 }
  0x63   :  { %v512_v47 = vshrl.u32 %v511_v18, 5  ;;  %v517_v29 = vshrl.u32 %v793_v35, %v514_v57  ;;  %v520_v10 = vshrl.u32 %v794_v38, %v514_v57  ;;  %v246_v43 = vadd.s32 127, %v245_v22 }
  0x64   :  { %v438_v51 = vadd.s32 536870912, %v437_v24  ;;  %v522_v53 = vshll.u32 %v794_v38, %v513_v21  ;;  %v523_v55 = vshrl.u32 %v795_v41, %v514_v57  ;;  %v349_v30 = vsub.s32 4294967266, %v1110_v31 }
  0x65   :  { %v507_v44 = vor.u32 8388608, %v506_v54  ;;  %v525_v58 = vshll.u32 %v795_v41, %v513_v21  ;;  %v526_v59 = vshrl.u32 %v796_v48, %v514_v57  ;;  %v518_v37 = vor.u32 %v517_v29, %v516_v40 }
  0x66   :  { %v1123_v52 = vshrl.u32 %v438_v51, 30  ;;  %v521_v60 = vor.u32 %v520_v10, %v519_v42  ;;  %v528_v35 = vshll.u32 %v796_v48, %v513_v21  ;;  %v524_v61 = vor.u32 %v523_v55, %v522_v53 }
  0x67   :  { %v527_v4 = vor.u32 %v526_v59, %v525_v58  ;;  %v529_v5 = vshrl.u32 %v797_v56, %v514_v57  ;;  %vm531_vm12 = vcmp.lt.s32.totalorder %v512_v47, 1  ;;  %v243_v38 = vshrl.u32 %v225_v50, %v241_v23 }
  0x68   :  { %v345_v8 = vsub.s32 32, %v1110_v31  ;;  %v440_v34 = vshll.u32 %v1123_v52, 30  ;;  %vm534_vm13 = vcmp.lt.s32.totalorder %v512_v47, 4  ;;  %v350_v41 = vadd.s32 127, %v349_v30 }
  0x69   :  { %v515_v12 = vshrl.u32 %v792_v33, %v514_v57  ;;  %v530_v3 = vor.u32 %v529_v5, %v528_v35  ;;  %vm533_vm14 = vcmp.lt.s32.totalorder %v512_v47, 3  ;;  %vm532_vm15 = vcmp.lt.s32.totalorder %v512_v47, 2 }
  0x6a   :  { %v441_v16 = vsub.s32 %v437_v24, %v440_v34  ;;  %v536_v48 = vsel %vm534_vm13, %v524_v61, 2102212464  ;;  %v539_v15 = vsel %vm531_vm12, %v518_v37, %v521_v60  ;;  %v247_v18 = vshll.u32 %v246_v43, 23 }
  0x6b   :  { %v540_v56 = vsel %vm534_vm13, %v527_v4, 920167782  ;;  %v543_v19 = vsel %vm531_vm12, %v521_v60, %v524_v61  ;;  %v547_v50 = vshll.u32 %v507_v44, 8  ;;  %v346_v28 = vshll.u32 %v1055_v1, %v1110_v31 }
  0x6c   :  { %v443_v21 = vsub.s32 0, %v441_v16  ;;  %v541_v33 = vsel %vm533_vm14, %v524_v61, %v540_v56  ;;  %v544_v22 = vsel %vm534_vm13, %v530_v3, 1326507024  ;;  %v535_v23 = vsel %vm531_vm12, %v515_v12, %v518_v37 }
  0x6d   :  { %v537_v36 = vsel %vm533_vm14, %v521_v60, %v536_v48  ;;  %v542_v54 = vsel %vm532_vm15, %v539_v15, %v541_v33  ;;  %v545_v57 = vsel %vm533_vm14, %v527_v4, %v544_v22  ;;  %v347_v24 = vshrl.u32 %v329_v27, %v345_v8 }
  0x6e   :  { %v351_v40 = vshll.u32 %v350_v41, 23  ;;  %v683_v42 = vmin.u32 %v443_v21, %v441_v16  ;;  %v546_v29 = vsel %vm532_vm15, %v543_v19, %v545_v57  ;;  %v538_v53 = vsel %vm532_vm15, %v535_v23, %v537_v36 }
  0x6f   :  { %v1143_v10 = vmul.u32.u64.low %v547_v50, %v546_v29  ;;  %v1144_v1 = vmul.u32.u64.high %v547_v50, %v546_v29, %v1143_v10  ;;  %v1146_v31 = vmul.u32.u64.low %v547_v50, %v542_v54  ;;  %v1147_v43 = vmul.u32.u64.high %v547_v50, %v542_v54, %v1146_v31 }
  0x70   :  { %v445_v51 = vclz %v683_v42  ;;  %v244_v55 = vor.u32 %v243_v38, %v242_v39  ;;  %v248_v30 = vor.u32 4788187, %v247_v18  ;;  %v145_v44 = vand.u32 2147483647, %v1101_v14 }
  0x71   :  { %v147_v27 = vcvt.s32.f32 %v1099_v46  ;;  %v348_v58 = vor.u32 %v347_v24, %v346_v28  ;;  %v352_v37 = vor.u32 4788187, %v351_v40  ;;  %v554_v60 = vmul.u32 %v547_v50, %v538_v53 }
  0x72   :  { %v684_v59 = vadd.s32 4294967294, %v445_v51  ;;  %vm556_vm0 = vc.u32 %v1144_v1, %v1146_v31  ;;  %v557_v35 = vadd.s32 1, %v1147_v43  ;;  %v433_v61 = vadd.s32 %v1086_v32, %v1083_v62 }
  0x73   :  { %v249_v47 = vand.u32 2147483647, %v248_v30  ;;  %v251_v39 = vcvt.s32.f32 %v244_v55  ;;  %v148_v8 = vmul.f32 %v147_v27, %v145_v44  ;;  %v353_v34 = vand.u32 2147483647, %v352_v37 }
  0x74   :  { %vm685_vm1 = vcmp.lt.s32.totalorder %v684_v59, 0  ;;  %v558_v14 = vsel %vm556_vm0, %v557_v35, %v1147_v43  ;;  %v355_v41 = vcvt.s32.f32 %v348_v58  ;;  %vm171_vm3 = vcmp.lt.s32.totalorder %v857_v2, 0 }
  0x75   :  { %v448_v4 = vsel %vm685_vm1, 0, %v684_v59  ;;  %v559_v12 = vadd.s32 %v558_v14, %v554_v60  ;;  %v252_v15 = vmul.f32 %v251_v39, %v249_v47  ;;  %v149_v62 = vxor.u32 2147483648, %v148_v8 }
  0x76   :  { %v449_v5 = vsub.s32 32, %v448_v4  ;;  %v450_v46 = vshll.u32 %v441_v16, %v448_v4  ;;  %v453_v38 = vsub.s32 4294967266, %v448_v4  ;;  %v356_v32 = vmul.f32 %v355_v41, %v353_v34 }
  0x77   :  { %v560_v18 = vadd.s32 536870912, %v559_v12  ;;  %v253_v16 = vxor.u32 2147483648, %v252_v15  ;;  %vm1166_vm4 = vcmp.le.f32.partialorder %v65_v9, 0.7853982  ;;  %v150_v36 = vsel %vm67_vm2, %v149_v62, %v148_v8 }
  0x78   :  { %v451_v3 = vshrl.u32 %v433_v61, %v449_v5  ;;  %v454_v48 = vadd.s32 127, %v453_v38  ;;  %v357_v54 = vxor.u32 2147483648, %v356_v32  ;;  %vm275_vm5 = vcmp.lt.s32.totalorder %v866_v7, 0 }
  0x79   :  { %v1159_v50 = vshrl.u32 %v560_v18, 30  ;;  %v151_v40 = vsub.s32 4, %v989_v0  ;;  %vm1176_vm6 = vcmp.le.f32.partialorder %v169_v11, 0.7853982  ;;  %v254_v9 = vsel %vm171_vm3, %v253_v16, %v252_v15 }
  0x7a   :  { %v452_v56 = vor.u32 %v451_v3, %v450_v46  ;;  %v455_v19 = vshll.u32 %v454_v48, 23  ;;  %v153_v10 = vsel %vm1166_vm4, %v863_v6, %v150_v36  ;;  %v255_v43 = vsub.s32 4, %v1028_v13 }
  0x7b   :  { %v562_v33 = vshll.u32 %v1159_v50, 30  ;;  %vm379_vm7 = vcmp.lt.s32.totalorder %v999_v20, 0  ;;  %vm1189_vm8 = vcmp.le.f32.partialorder %v273_v45, 0.7853982  ;;  %v358_v53 = vsel %vm275_vm5, %v357_v54, %v356_v32 }
  0x7c   :  { %v456_v28 = vor.u32 4788187, %v455_v19  ;;  %v459_v21 = vcvt.s32.f32 %v452_v56  ;;  %v359_v55 = vsub.s32 4, %v1046_v26  ;;  %v257_v44 = vsel %vm1176_vm6, %v857_v2, %v254_v9 }
  0x7d   :  { %v563_v57 = vsub.s32 %v559_v12, %v562_v33  ;;  %vm1201_vm9 = vcmp.le.f32.partialorder %v377_v25, 0.7853982  ;;  %v152_v45 = vsel %vm67_vm2, %v151_v40, %v989_v0  ;;  %723 = vcosq.f32 %v153_v10 }
  0x7e   :  { %v457_v22 = vand.u32 2147483647, %v456_v28  ;;  %725 = vsinq.f32 %v153_v10  ;;  %v256_v37 = vsel %vm171_vm3, %v255_v43, %v1028_v13  ;;  %v361_v25 = vsel %vm1189_vm8, %v866_v7, %v358_v53 }
  0x7f   :  { %v565_v29 = vsub.s32 0, %v563_v57  ;;  %727 = vcosq.f32 %v257_v44  ;;  %v360_v60 = vsel %vm275_vm5, %v359_v55, %v1046_v26  ;;  %v154_v35 = vsel %vm1166_vm4, 0, %v152_v45 }
  0x80   :  { %v460_v24 = vmul.f32 %v459_v21, %v457_v22  ;;  %729 = vsinq.f32 %v257_v44  ;;  %v463_v61 = vsub.s32 4, %v1123_v52  ;;  %v258_v47 = vsel %vm1176_vm6, 0, %v256_v37 }
  0x81   :  { %v688_v30 = vmin.u32 %v565_v29, %v563_v57  ;;  %731 = vcosq.f32 %v361_v25  ;;  %v555_v39 = vadd.s32 %v1146_v31, %v1144_v1  ;;  %v362_v26 = vsel %vm1189_vm8, 0, %v360_v60 }
  0x82   :  { %v461_v51 = vxor.u32 2147483648, %v460_v24  ;;  %733 = vsinq.f32 %v361_v25  ;;  %v158_v38 = vadd.s32 3, %v154_v35  ;;  %v262_v8 = vadd.s32 3, %v258_v47 }
  0x83   :  { %v567_v59 = vclz %v688_v30  ;;  %v464_v34 = vsel %vm379_vm7, %v463_v61, %v1123_v52  ;;  %v366_v1 = vadd.s32 3, %v362_v26  ;;  %v585_v23 = vsub.s32 4, %v1159_v50 }
  0x84   :  { %v462_v58 = vsel %vm379_vm7, %v461_v51, %v460_v24  ;;  %v466_v3 = vsel %vm1201_vm9, 0, %v464_v34  ;;  %v159_v56 = vand.u32 3, %v158_v38  ;;  %v263_v19 = vand.u32 3, %v262_v8 }
  0x85   :  { %v689_v0 = vadd.s32 4294967294, %v567_v59  ;;  %v465_v13 = vsel %vm1201_vm9, %v999_v20, %v462_v58  ;;  %v367_v16 = vand.u32 3, %v366_v1  ;;  %v470_v33 = vadd.s32 3, %v466_v3  ;;  %v691_v3 = vld [vmem:[%s1296_s4] ss:$0 sm:$0xff]  ;;  %s765_s4 = scalar_lea.vmem %s659_s15, 512 }
  0x86   :  { %735 = vcosq.f32 %v465_v13  ;;  %vm160_vm11 = vcmp.lt.s32.totalorder %v159_v56, 2  ;;  %vm161_vm12 = vcmp.eq.s32.totalorder %v159_v56, 0  ;;  %vm164_vm13 = vcmp.eq.s32.totalorder %v159_v56, 2  ;;  %p766_p8 = scmp.ne.s32.totalorder %s659_s15, %s765_s4  ;;  %p771_p10 = scmp.lt.s32.totalorder %s765_s4, %s765_s4 }
  0x87   :  { %vm690_vm10 = vcmp.lt.s32.totalorder %v689_v0, 0  ;;  %737 = vsinq.f32 %v465_v13  ;;  %v724_v31 = vpop.eup %723  ;;  %vm264_vm14 = vcmp.lt.s32.totalorder %v263_v19, 2  ;;  %vm265_vm15 = vcmp.eq.s32.totalorder %v263_v19, 0 }
  0x88   :  { %v570_v4 = vsel %vm690_vm10, 0, %v689_v0  ;;  %v726_v18 = vpop.eup %725  ;;  %vm268_vm0 = vcmp.eq.s32.totalorder %v263_v19, 2  ;;  %vm501_vm1 = vcmp.lt.s32.totalorder %v1050_v49, 0  ;;  %v165_v40 = vxor.u32 2147483648, %v724_v31  ;;  %p772_p11 = por %p771_p10, %p770_p9 }
  0x89   :  { %v571_v14 = vsub.s32 32, %v570_v4  ;;  %v572_v5 = vshll.u32 %v563_v57, %v570_v4  ;;  %v575_v46 = vsub.s32 4294967266, %v570_v4  ;;  %v728_v62 = vpop.eup %727  ;;  %vm368_vm2 = vcmp.lt.s32.totalorder %v367_v16, 2 }
  0x8a   :  { %v730_v21 = vpop.eup %729  ;;  %v471_v42 = vand.u32 3, %v470_v33  ;;  %vm1240_vm3 = vcmp.le.f32.partialorder %v499_v17, 0.7853982  ;;  %v162_v29 = vxor.u32 2147483648, %v726_v18  ;;  %v269_v10 = vxor.u32 2147483648, %v728_v62  ;;  %p773_p12 = pnand %p772_p11, %p766_p8 }
  0x8b   :  { %v573_v41 = vshrl.u32 %v555_v39, %v571_v14  ;;  %v576_v12 = vadd.s32 127, %v575_v46  ;;  %v732_v52 = vpop.eup %731  ;;  %v586_v51 = vsel %vm501_vm1, %v585_v23, %v1159_v50  ;;  %v266_v11 = vxor.u32 2147483648, %v730_v21  ;;  %v39_v14 = vld [vmem:[%s1295_s3] sm:$0x1] }
  0x8c   :  { %v734_v36 = vpop.eup %733  ;;  %vm369_vm4 = vcmp.eq.s32.totalorder %v367_v16, 0  ;;  %vm372_vm5 = vcmp.eq.s32.totalorder %v367_v16, 2  ;;  %v373_v53 = vxor.u32 2147483648, %v732_v52  ;;  %vm473_vm6 = vcmp.eq.s32.totalorder %v471_v42, 0 }
  0x8d   :  { %v574_v48 = vor.u32 %v573_v41, %v572_v5  ;;  %v577_v15 = vshll.u32 %v576_v12, 23  ;;  %v370_v55 = vxor.u32 2147483648, %v734_v36  ;;  %vm476_vm7 = vcmp.eq.s32.totalorder %v471_v42, 2 }
  0x8e   :  { %v588_v45 = vsel %vm1240_vm3, 0, %v586_v51  ;;  %v163_v50 = vsel %vm161_vm12, %v724_v31, %v162_v29  ;;  %v166_v58 = vsel %vm164_vm13, %v165_v40, %v726_v18  ;;  %v270_v59 = vsel %vm268_vm0, %v269_v10, %v730_v21 }
  0x8f   :  { %v578_v32 = vor.u32 4788187, %v577_v15  ;;  %v581_v28 = vcvt.s32.f32 %v574_v48  ;;  %v267_v37 = vsel %vm265_vm15, %v728_v62, %v266_v11  ;;  %v374_v25 = vsel %vm372_vm5, %v373_v53, %v734_v36 }
  0x90   :  { %v736_v54 = vpop.eup %735  ;;  %vm472_vm8 = vcmp.lt.s32.totalorder %v471_v42, 2  ;;  %v371_v60 = vsel %vm369_vm4, %v732_v52, %v370_v55  ;;  %v592_v61 = vadd.s32 3, %v588_v45  ;;  %vm157_vm9 = vweird.f32 %v863_v6 }
  0x91   :  { %v579_v22 = vand.u32 2147483647, %v578_v32  ;;  %v738_v24 = vpop.eup %737  ;;  %v477_v44 = vxor.u32 2147483648, %v736_v54  ;;  %v167_v13 = vsel %vm160_vm11, %v163_v50, %v166_v58  ;;  %vm261_vm10 = vweird.f32 %v857_v2 }
  0x92   :  { %v474_v30 = vxor.u32 2147483648, %v738_v24  ;;  %v271_v47 = vsel %vm264_vm14, %v267_v37, %v270_v59  ;;  %vm365_vm12 = vweird.f32 %v866_v7  ;;  %v375_v39 = vsel %vm368_vm2, %v371_v60, %v374_v25 }
  0x93   :  { %v582_v57 = vmul.f32 %v581_v28, %v579_v22  ;;  %v478_v35 = vsel %vm476_vm7, %v477_v44, %v738_v24  ;;  %vm469_vm13 = vweird.f32 %v999_v20  ;;  %v593_v4 = vand.u32 3, %v592_v61 }
  0x94   :  { %v475_v0 = vsel %vm473_vm6, %v736_v54, %v474_v30  ;;  %v168_v5 = vsel %vm157_vm9, nan, %v167_v13  ;;  %v272_v6 = vsel %vm261_vm10, nan, %v271_v47  ;;  %v376_v46 = vsel %vm365_vm12, nan, %v375_v39 }
  0x95   :  { %v583_v43 = vxor.u32 2147483648, %v582_v57  ;;  %v479_v26 = vsel %vm472_vm8, %v475_v0, %v478_v35  ;;  %v481_v2 = vmul.f32 %v168_v5, %v39_v14  ;;  %v482_v34 = vmul.f32 %v272_v6, %v39_v14 }
  0x96   :  { %v480_v38 = vsel %vm469_vm13, nan, %v479_v26  ;;  %vm598_vm11 = vcmp.eq.s32.totalorder %v593_v4, 2  ;;  %v483_v7 = vmul.f32 %v376_v46, %v39_v14  ;;  %vm595_vm14 = vcmp.eq.s32.totalorder %v593_v4, 0 }
  0x97   :  { %v584_v17 = vsel %vm501_vm1, %v583_v43, %v582_v57  ;;  %v484_v12 = vmul.f32 %v480_v38, %v39_v14  ;;  %vm594_vm15 = vcmp.lt.s32.totalorder %v593_v4, 2  ;;  %vm591_vm0 = vweird.f32 %v1050_v49 }
  0x98   :  { %v587_v27 = vsel %vm1240_vm3, %v1050_v49, %v584_v17  ;;  %v617_v15 = vrot.slane %v481_v2, %v1035_v63  ;;  %v621_v56 = vrot.slane %v482_v34, %v1035_v63  ;;  %v625_v19 = vrot.slane %v483_v7, %v1035_v63  ;;  %v692_v49 = vld [vmem:[%s1297_s5] ss:$0 sm:$0xff] }
  0x99   :  { %739 = vcosq.f32 %v587_v27  ;;  %v629_v62 = vrot.slane %v484_v12, %v1035_v63  ;;  %vm648_vm1 = vcmask 654336  }
  0x9a   :  { %741 = vsinq.f32 %v587_v27 }
  0xa3   :  { %v740_v8 = vpop.eup %739 }
  0xa4   :  { %v742_v41 = vpop.eup %741  ;;  %v599_v1 = vxor.u32 2147483648, %v740_v8 }
  0xa5   :  { %v596_v20 = vxor.u32 2147483648, %v742_v41 }
  0xa6   :  { %v600_v31 = vsel %vm598_vm11, %v599_v1, %v742_v41 }
  0xa7   :  { %v597_v48 = vsel %vm595_vm14, %v740_v8, %v596_v20 }
  0xa8   :  { %v601_v18 = vsel %vm594_vm15, %v597_v48, %v600_v31 }
  0xa9   :  { %v602_v32 = vsel %vm591_vm0, nan, %v601_v18 }
  0xaa   :  { %v609_v28 = vmul.f32 %v691_v3, %v602_v32 }
  0xac   :  { %v634_v21 = vadd.f32 %v617_v15, %v609_v28  ;;  %v635_v16 = vadd.f32 %v621_v56, %v609_v28  ;;  %v636_v33 = vadd.f32 %v625_v19, %v609_v28  ;;  %v637_v52 = vadd.f32 %v629_v62, %v609_v28 }
  0xae   :  { %v644_v22 = vadd.f32 %v692_v49, %v634_v21  ;;  %v645_v23 = vadd.f32 %v692_v49, %v635_v16  ;;  %v646_v36 = vadd.f32 %v692_v49, %v636_v33  ;;  %v647_v54 = vadd.f32 %v692_v49, %v637_v52 }
  0xb0   :  { %649 = vst.msk [vmem:[#allocation5] sm:$0xff] %vm648_vm1, %v644_v22  ;;  %650 = vst.msk [vmem:[#allocation5 + $0x8] sm:$0xff] %vm648_vm1, %v645_v23 }
  0xb1   :  { %651 = vst.msk [vmem:[#allocation5 + $0x10] sm:$0xff] %vm648_vm1, %v646_v36  ;;  %652 = vst.msk [vmem:[#allocation5 + $0x18] sm:$0xff] %vm648_vm1, %v647_v54 }
  0xb2   :  { %776 = shalt.err (!%p773_p12)
}
  0xb3   :  { %s777_s19 = scalar_lea.hbm %s1298_s6, 512 }
  0xb4   :  { %p778_p13 = scmp.ne.s32.totalorder %s1298_s6, %s777_s19  ;;  %p781_p0 = scmp.lt.u32.totalorder %s777_s19, %s1298_s6 }
  0xb6   :  { %p783_p1 = pnand %p781_p0, %p778_p13 }
  0xb8   :  { %786 = shalt.err (!%p783_p1)
}
  0xb9   :  { %s799_s24 = smov 128   ;;  %s800_s25 = smov 8  }
  0xba   :  { %664 = dma.vmem_to_hbm [thread:$0]  %s659_s15, 512, %s1298_s6, [#allocation4], %s799_s24, %s799_s24, %s800_s25  }
  0xbb   :  { %789 = dma.done.wait [#allocation4], 512  }
  0xbc   :  { %790 = vsyncadd [#allocation4], 4294966784 }
  0xbd   :  { %668 = vsyncpa [#allocation3], 1 }
  0xbe   :  { %669 = vsyncpa [#allocation4], 1 }

</bundles_post_ra>
